<compile_context>
chip_gen: v5e
topology: v5e:2x2
jax: 0.10.0
libtpu: 0.0.40
codegen_flags: <defaults>
</compile_context>

<pallas_src>
import functools

import jax
import jax.numpy as jnp
import numpy as np
from jax.experimental import pallas as pl
from jax.experimental.pallas import tpu as pltpu

EPS = 1e-5


# ---------------------------------------------------------------------------
# Kernels.  x arrives as a (1, Cin, tile) block (channels on sublanes, spatial
# on lanes); weights / per-channel vectors are small full blocks resident in
# VMEM for the whole grid.
# ---------------------------------------------------------------------------
def _is_first_step():
    return jnp.logical_and(pl.program_id(0) == 0, pl.program_id(1) == 0)


def _stats1_kernel(has_res, *refs):
    """Accumulate per-channel sum / sum-of-squares of W1 @ x (and Wr @ x)."""
    if has_res:
        x_ref, w1_ref, wr_ref, s1_ref, q1_ref, sr_ref, qr_ref = refs
    else:
        x_ref, w1_ref, s1_ref, q1_ref = refs
        wr_ref = sr_ref = qr_ref = None

    @pl.when(_is_first_step())
    def _():
        s1_ref[...] = jnp.zeros_like(s1_ref)
        q1_ref[...] = jnp.zeros_like(q1_ref)
        if has_res:
            sr_ref[...] = jnp.zeros_like(sr_ref)
            qr_ref[...] = jnp.zeros_like(qr_ref)

    x = x_ref[0]                                               # (Cin, t)
    h1 = jnp.dot(w1_ref[...], x, preferred_element_type=jnp.float32)
    s1_ref[...] += jnp.sum(h1, axis=1, keepdims=True)
    q1_ref[...] += jnp.sum(h1 * h1, axis=1, keepdims=True)
    if has_res:
        r = jnp.dot(wr_ref[...], x, preferred_element_type=jnp.float32)
        sr_ref[...] += jnp.sum(r, axis=1, keepdims=True)
        qr_ref[...] += jnp.sum(r * r, axis=1, keepdims=True)


def _stats3_kernel(x_ref, w1f_ref, b1f_ref, w3_ref, s3_ref, q3_ref):
    """Accumulate per-channel sum / sum-of-squares of conv3(relu(bn1(conv1 x)))."""

    @pl.when(_is_first_step())
    def _():
        s3_ref[...] = jnp.zeros_like(s3_ref)
        q3_ref[...] = jnp.zeros_like(q3_ref)

    x = x_ref[0]
    a1 = jnp.maximum(
        jnp.dot(w1f_ref[...], x, preferred_element_type=jnp.float32) + b1f_ref[...],
        0.0)
    h3 = jnp.dot(w3_ref[...], a1, preferred_element_type=jnp.float32)
    s3_ref[...] += jnp.sum(h3, axis=1, keepdims=True)
    q3_ref[...] += jnp.sum(h3 * h3, axis=1, keepdims=True)


def _main_kernel(has_res, *refs):
    """Fully folded main pass: every BN is already a per-channel affine."""
    if has_res:
        x_ref, w1f_ref, b1f_ref, w3f_ref, b3f_ref, wrf_ref, brf_ref, o_ref = refs
    else:
        x_ref, w1f_ref, b1f_ref, w3f_ref, b3f_ref, o_ref = refs

    x = x_ref[0]                                               # (Cin, t)
    a1 = jnp.maximum(
        jnp.dot(w1f_ref[...], x, preferred_element_type=jnp.float32) + b1f_ref[...],
        0.0)
    out = jnp.dot(w3f_ref[...], a1, preferred_element_type=jnp.float32) + b3f_ref[...]
    if has_res:
        out = out + jnp.dot(wrf_ref[...], x,
                            preferred_element_type=jnp.float32) + brf_ref[...]
    else:
        out = out + x
    o_ref[0] = jnp.maximum(out, 0.0)


# ---------------------------------------------------------------------------
# Wrapper.
# ---------------------------------------------------------------------------
def _pick_tile(S, target):
    """Largest lane-dense spatial tile: multiple of 128 dividing S, or S itself."""
    if S <= target or S % 128 != 0:
        return S
    t = (target // 128) * 128
    while S % t:
        t -= 128
    return t


def _rep_spec(shape):
    """Block covering the whole (small) array, resident across the grid."""
    nd = len(shape)
    return pl.BlockSpec(shape, lambda n, s, nd=nd: (0,) * nd)


def _fold_bn(w, ssum, sqsum, gamma, beta, count):
    """Fold training-mode BN (batch stats) into the preceding 1x1 conv."""
    mean = ssum / count
    var = sqsum / count - mean * mean            # biased variance
    scale = gamma * jax.lax.rsqrt(var + EPS)     # (C, 1)
    shift = beta - mean * scale
    return scale * w, shift


@functools.partial(jax.jit, static_argnames=("outplanes", "tile_target"))
def bottleneck1x1(x_nchw, params, outplanes=None, tile_target=2048):
    N, Cin, H, W = x_nchw.shape
    Cout = outplanes or Cin
    S = H * W
    M = N * S
    has_res = "wr" in params
    if not has_res:
        assert Cin == Cout, "identity residual requires inplanes == outplanes"
    width = params["w1"].shape[0]

    x3 = x_nchw.reshape(N, Cin, S).astype(jnp.float32)   # free view, no transpose
    t = _pick_tile(S, tile_target)
    grid = (N, S // t)
    x_spec = pl.BlockSpec((1, Cin, t), lambda n, s: (n, 0, s))
    stats_cp = pltpu.CompilerParams(dimension_semantics=("arbitrary", "arbitrary"))
    vec = lambda c: jax.ShapeDtypeStruct((c, 1), jnp.float32)

    # ---- pass 1: batch stats for bn1 (and the residual-projection bn) -------
    if has_res:
        out_shape1 = (vec(width), vec(width), vec(Cout), vec(Cout))
        in1 = (x3, params["w1"], params["wr"])
    else:
        out_shape1 = (vec(width), vec(width))
        in1 = (x3, params["w1"])
    stats1 = pl.pallas_call(
        functools.partial(_stats1_kernel, has_res),
        out_shape=out_shape1,
        grid=grid,
        in_specs=[x_spec] + [_rep_spec(a.shape) for a in in1[1:]],
        out_specs=tuple(_rep_spec(o.shape) for o in out_shape1),
        compiler_params=stats_cp,
    )(*in1)
    if has_res:
        s1, q1, sr, qr = stats1
    else:
        s1, q1 = stats1
    w1f, b1f = _fold_bn(params["w1"], s1, q1, params["g1"], params["b1"], M)
    if has_res:
        wrf, brf = _fold_bn(params["wr"], sr, qr, params["gr"], params["br"], M)

    # ---- pass 2: batch stats for bn3 ----------------------------------------
    s3, q3 = pl.pallas_call(
        _stats3_kernel,
        out_shape=(vec(Cout), vec(Cout)),
        grid=grid,
        in_specs=[x_spec, _rep_spec(w1f.shape), _rep_spec(b1f.shape),
                  _rep_spec(params["w3"].shape)],
        out_specs=(_rep_spec((Cout, 1)), _rep_spec((Cout, 1))),
        compiler_params=stats_cp,
    )(x3, w1f, b1f, params["w3"])
    w3f, b3f = _fold_bn(params["w3"], s3, q3, params["g3"], params["b3"], M)

    # ---- pass 3: fully folded, tiled, parallel main pass ---------------------
    if has_res:
        main_in = (x3, w1f, b1f, w3f, b3f, wrf, brf)
    else:
        main_in = (x3, w1f, b1f, w3f, b3f)
    flops = 2 * M * (Cin * width + width * Cout + (Cin * Cout if has_res else 0))
    bytes_accessed = 4 * M * (Cin + Cout) + sum(
        4 * int(np.prod(a.shape)) for a in main_in[1:])

    out3 = pl.pallas_call(
        functools.partial(_main_kernel, has_res),
        out_shape=jax.ShapeDtypeStruct((N, Cout, S), jnp.float32),
        grid=grid,
        in_specs=[x_spec] + [_rep_spec(a.shape) for a in main_in[1:]],
        out_specs=pl.BlockSpec((1, Cout, t), lambda n, s: (n, 0, s)),
        compiler_params=pltpu.CompilerParams(
            dimension_semantics=("parallel", "parallel")),
        cost_estimate=pl.CostEstimate(
            flops=flops, transcendentals=0, bytes_accessed=bytes_accessed),
    )(*main_in)

    return out3.reshape(N, Cout, H, W)


# ---------------------------------------------------------------------------
# Parameters + pure-JAX reference (PyTorch training-mode BN semantics).
# ---------------------------------------------------------------------------
def init_params(key, inplanes, outplanes=None):
    outplanes = outplanes or inplanes
    width = min(inplanes, outplanes, 32) // 2
    ks = jax.random.split(key, 9)

    def conv_w(k, cin, cout):        # PyTorch conv1x1 weight (cout, cin)
        return 0.2 * jax.random.normal(k, (cout, cin), jnp.float32)

    def bn_p(kg, kb, c):
        return (1.0 + 0.1 * jax.random.normal(kg, (c, 1), jnp.float32),
                0.1 * jax.random.normal(kb, (c, 1), jnp.float32))

    g1, b1 = bn_p(ks[1], ks[2], width)
    g3, b3 = bn_p(ks[4], ks[5], outplanes)
    params = {"w1": conv_w(ks[0], inplanes, width), "g1": g1, "b1": b1,
              "w3": conv_w(ks[3], width, outplanes), "g3": g3, "b3": b3}
    if inplanes != outplanes:
        gr, br = bn_p(ks[7], ks[8], outplanes)
        params["wr"] = conv_w(ks[6], inplanes, outplanes)
        params["gr"], params["br"] = gr, br
    return params


def _reference(x_nchw, params, outplanes=None):
    N, Cin, H, W = x_nchw.shape
    Cout = outplanes or Cin
    x = x_nchw.reshape(N, Cin, H * W).astype(jnp.float32)

    def conv(w, h):
        return jnp.einsum("oc,ncs->nos", w, h)

    def bn(h, gamma, beta):
        mean = jnp.mean(h, axis=(0, 2), keepdims=True)
        var = jnp.mean((h - mean) ** 2, axis=(0, 2), keepdims=True)
        return (h - mean) * jax.lax.rsqrt(var + EPS) * gamma[None] + beta[None]

    a1 = jnp.maximum(bn(conv(params["w1"], x), params["g1"], params["b1"]), 0.0)
    out = bn(conv(params["w3"], a1), params["g3"], params["b3"])
    idn = bn(conv(params["wr"], x), params["gr"], params["br"]) if "wr" in params else x
    out = jnp.maximum(out + idn, 0.0)
    return out.reshape(N, Cout, H, W)


if __name__ == "__main__":
    key = jax.random.PRNGKey(0)
    k_x, k_p, k_x2, k_p2 = jax.random.split(key, 4)

    # Case 1: inplanes != outplanes -> exercises the 1x1+BN residual projection.
    inplanes, outplanes = 4, 8
    x = jax.random.normal(k_x, (2, inplanes, 16, 16), jnp.float32)
    params = init_params(k_p, inplanes, outplanes)
    out = jax.block_until_ready(bottleneck1x1(x, params, outplanes=outplanes))
    ref = jax.block_until_ready(_reference(x, params, outplanes=outplanes))
    np.testing.assert_allclose(np.asarray(out), np.asarray(ref), rtol=1e-4, atol=1e-4)
    assert out.shape == (2, outplanes, 16, 16)

    # Case 2: inplanes == outplanes -> identity residual path.
    x2 = jax.random.normal(k_x2, (2, 8, 16, 16), jnp.float32)
    params2 = init_params(k_p2, 8, 8)
    out2 = jax.block_until_ready(bottleneck1x1(x2, params2))
    ref2 = jax.block_until_ready(_reference(x2, params2))
    np.testing.assert_allclose(np.asarray(out2), np.asarray(ref2), rtol=1e-4, atol=1e-4)
    assert out2.shape == (2, 8, 16, 16)

    print("KERNEL_OK")
</pallas_src>

<mosaic_0001>
module attributes {stable_mosaic.version = 11 : i64} {
  func.func @_stats3_kernel(%arg0: i32, %arg1: i32, %arg2: memref<1x4x256xf32, #tpu.memory_space<vmem>>, %arg3: memref<2x4xf32, #tpu.memory_space<vmem>>, %arg4: memref<2x1xf32, #tpu.memory_space<vmem>>, %arg5: memref<8x2xf32, #tpu.memory_space<vmem>>, %arg6: memref<8x1xf32, #tpu.memory_space<vmem>>, %arg7: memref<8x1xf32, #tpu.memory_space<vmem>>) attributes {dimension_semantics = [#tpu.dimension_semantics<arbitrary>, #tpu.dimension_semantics<arbitrary>], iteration_bounds = array<i64: 2, 1>, scalar_prefetch = 0 : i64, scratch_operands = 0 : i64, tpu.core_type = #tpu.core_type<tc>, window_params = [{transform_indices = @transform_0, window_bounds = array<i64: 1, 4, 256>}, {pipeline_mode = #tpu.pipeline_mode<synchronous>, transform_indices = @transform_1, window_bounds = array<i64: 2, 4>}, {pipeline_mode = #tpu.pipeline_mode<synchronous>, transform_indices = @transform_2, window_bounds = array<i64: 2, 1>}, {pipeline_mode = #tpu.pipeline_mode<synchronous>, transform_indices = @transform_3, window_bounds = array<i64: 8, 2>}, {pipeline_mode = #tpu.pipeline_mode<synchronous>, transform_indices = @transform_4, window_bounds = array<i64: 8, 1>}, {pipeline_mode = #tpu.pipeline_mode<synchronous>, transform_indices = @transform_5, window_bounds = array<i64: 8, 1>}]} {
    %c0_i32 = arith.constant 0 : i32
    %0 = arith.cmpi eq, %arg0, %c0_i32 : i32
    %c0_i32_0 = arith.constant 0 : i32
    %1 = arith.cmpi eq, %arg1, %c0_i32_0 : i32
    %2 = arith.andi %0, %1 : i1
    %3 = arith.extui %2 : i1 to i32
    %c0_i32_1 = arith.constant 0 : i32
    %4 = arith.cmpi ne, %3, %c0_i32_1 : i32
    scf.if %4 {
      %cst_22 = arith.constant 0.000000e+00 : f32
      %27 = vector.broadcast %cst_22 : f32 to vector<8x1xf32>
      %c0_23 = arith.constant 0 : index
      %c0_24 = arith.constant 0 : index
      %28 = vector.load %arg6[%c0_23, %c0_24] : memref<8x1xf32, #tpu.memory_space<vmem>>, vector<8x1xf32>
      tpu.vector_store %arg6[%c0_23, %c0_24], %27 {strides = array<i32>} : memref<8x1xf32, #tpu.memory_space<vmem>>, vector<8x1xf32>,
      %cst_25 = arith.constant 0.000000e+00 : f32
      %29 = vector.broadcast %cst_25 : f32 to vector<8x1xf32>
      %c0_26 = arith.constant 0 : index
      %c0_27 = arith.constant 0 : index
      %30 = vector.load %arg7[%c0_26, %c0_27] : memref<8x1xf32, #tpu.memory_space<vmem>>, vector<8x1xf32>
      tpu.vector_store %arg7[%c0_26, %c0_27], %29 {strides = array<i32>} : memref<8x1xf32, #tpu.memory_space<vmem>>, vector<8x1xf32>,
    } else {
    }
    %c0 = arith.constant 0 : index
    %c0_2 = arith.constant 0 : index
    %c0_3 = arith.constant 0 : index
    %5 = vector.load %arg2[%c0, %c0_2, %c0_3] : memref<1x4x256xf32, #tpu.memory_space<vmem>>, vector<1x4x256xf32>
    %6 = vector.shape_cast %5 : vector<1x4x256xf32> to vector<4x256xf32>
    %c0_4 = arith.constant 0 : index
    %c0_5 = arith.constant 0 : index
    %7 = vector.load %arg3[%c0_4, %c0_5] : memref<2x4xf32, #tpu.memory_space<vmem>>, vector<2x4xf32>
    %cst = arith.constant dense<0.000000e+00> : vector<2x256xf32>
    %8 = tpu.matmul %7, %6, %cst {dimension_numbers = #tpu.dot_dimension_numbers<[1], [0], [0], [1], [0, 0, 1, 1], [], []>} : vector<2x4xf32>, vector<4x256xf32>, vector<2x256xf32> -> vector<2x256xf32>
    %c0_6 = arith.constant 0 : index
    %c0_7 = arith.constant 0 : index
    %9 = vector.load %arg4[%c0_6, %c0_7] : memref<2x1xf32, #tpu.memory_space<vmem>>, vector<2x1xf32>
    %10 = vector.broadcast %9 : vector<2x1xf32> to vector<2x256xf32>
    %11 = arith.addf %8, %10 : vector<2x256xf32>
    %cst_8 = arith.constant 0.000000e+00 : f32
    %12 = vector.broadcast %cst_8 : f32 to vector<2x256xf32>
    %13 = arith.maximumf %11, %12 : vector<2x256xf32>
    %c0_9 = arith.constant 0 : index
    %c0_10 = arith.constant 0 : index
    %14 = vector.load %arg5[%c0_9, %c0_10] : memref<8x2xf32, #tpu.memory_space<vmem>>, vector<8x2xf32>
    %cst_11 = arith.constant dense<0.000000e+00> : vector<8x256xf32>
    %15 = tpu.matmul %14, %13, %cst_11 {dimension_numbers = #tpu.dot_dimension_numbers<[1], [0], [0], [1], [0, 0, 1, 1], [], []>} : vector<8x2xf32>, vector<2x256xf32>, vector<8x256xf32> -> vector<8x256xf32>
    %c0_12 = arith.constant 0 : index
    %c0_13 = arith.constant 0 : index
    %16 = vector.load %arg6[%c0_12, %c0_13] : memref<8x1xf32, #tpu.memory_space<vmem>>, vector<8x1xf32>
    %cst_14 = arith.constant dense<0.000000e+00> : vector<8xf32>
    %17 = vector.multi_reduction <add>, %15, %cst_14 [1] : vector<8x256xf32> to vector<8xf32>
    %18 = vector.shape_cast %17 : vector<8xf32> to vector<8x1xf32>
    %19 = arith.addf %16, %18 : vector<8x1xf32>
    %c0_15 = arith.constant 0 : index
    %c0_16 = arith.constant 0 : index
    %20 = vector.load %arg6[%c0_15, %c0_16] : memref<8x1xf32, #tpu.memory_space<vmem>>, vector<8x1xf32>
    tpu.vector_store %arg6[%c0_15, %c0_16], %19 {strides = array<i32>} : memref<8x1xf32, #tpu.memory_space<vmem>>, vector<8x1xf32>,
    %c0_17 = arith.constant 0 : index
    %c0_18 = arith.constant 0 : index
    %21 = vector.load %arg7[%c0_17, %c0_18] : memref<8x1xf32, #tpu.memory_space<vmem>>, vector<8x1xf32>
    %22 = arith.mulf %15, %15 : vector<8x256xf32>
    %cst_19 = arith.constant dense<0.000000e+00> : vector<8xf32>
    %23 = vector.multi_reduction <add>, %22, %cst_19 [1] : vector<8x256xf32> to vector<8xf32>
    %24 = vector.shape_cast %23 : vector<8xf32> to vector<8x1xf32>
    %25 = arith.addf %21, %24 : vector<8x1xf32>
    %c0_20 = arith.constant 0 : index
    %c0_21 = arith.constant 0 : index
    %26 = vector.load %arg7[%c0_20, %c0_21] : memref<8x1xf32, #tpu.memory_space<vmem>>, vector<8x1xf32>
    tpu.vector_store %arg7[%c0_20, %c0_21], %25 {strides = array<i32>} : memref<8x1xf32, #tpu.memory_space<vmem>>, vector<8x1xf32>,
    return
  }
  func.func @transform_0(%arg0: i32, %arg1: i32) -> (i32, i32, i32) {
    %c0_i32 = arith.constant 0 : i32
    %c0_i32_0 = arith.constant 0 : i32
    return %arg0, %c0_i32, %arg1 : i32, i32, i32
  }
  func.func @transform_1(%arg0: i32, %arg1: i32) -> (i32, i32) {
    %c0_i32 = arith.constant 0 : i32
    %c0_i32_0 = arith.constant 0 : i32
    %c0_i32_1 = arith.constant 0 : i32
    return %c0_i32, %c0_i32_0 : i32, i32
  }
  func.func @transform_2(%arg0: i32, %arg1: i32) -> (i32, i32) {
    %c0_i32 = arith.constant 0 : i32
    %c0_i32_0 = arith.constant 0 : i32
    %c0_i32_1 = arith.constant 0 : i32
    return %c0_i32, %c0_i32_0 : i32, i32
  }
  func.func @transform_3(%arg0: i32, %arg1: i32) -> (i32, i32) {
    %c0_i32 = arith.constant 0 : i32
    %c0_i32_0 = arith.constant 0 : i32
    %c0_i32_1 = arith.constant 0 : i32
    return %c0_i32, %c0_i32_0 : i32, i32
  }
  func.func @transform_4(%arg0: i32, %arg1: i32) -> (i32, i32) {
    %c0_i32 = arith.constant 0 : i32
    %c0_i32_0 = arith.constant 0 : i32
    %c0_i32_1 = arith.constant 0 : i32
    return %c0_i32, %c0_i32_0 : i32, i32
  }
  func.func @transform_5(%arg0: i32, %arg1: i32) -> (i32, i32) {
    %c0_i32 = arith.constant 0 : i32
    %c0_i32_0 = arith.constant 0 : i32
    %c0_i32_1 = arith.constant 0 : i32
    return %c0_i32, %c0_i32_0 : i32, i32
  }
}

module attributes {stable_mosaic.version = 11 : i64} {
  func.func @_stats1_kernel(%arg0: i32, %arg1: i32, %arg2: memref<1x4x256xf32, #tpu.memory_space<vmem>>, %arg3: memref<2x4xf32, #tpu.memory_space<vmem>>, %arg4: memref<8x4xf32, #tpu.memory_space<vmem>>, %arg5: memref<2x1xf32, #tpu.memory_space<vmem>>, %arg6: memref<2x1xf32, #tpu.memory_space<vmem>>, %arg7: memref<8x1xf32, #tpu.memory_space<vmem>>, %arg8: memref<8x1xf32, #tpu.memory_space<vmem>>) attributes {dimension_semantics = [#tpu.dimension_semantics<arbitrary>, #tpu.dimension_semantics<arbitrary>], iteration_bounds = array<i64: 2, 1>, scalar_prefetch = 0 : i64, scratch_operands = 0 : i64, tpu.core_type = #tpu.core_type<tc>, window_params = [{transform_indices = @transform_0, window_bounds = array<i64: 1, 4, 256>}, {pipeline_mode = #tpu.pipeline_mode<synchronous>, transform_indices = @transform_1, window_bounds = array<i64: 2, 4>}, {pipeline_mode = #tpu.pipeline_mode<synchronous>, transform_indices = @transform_2, window_bounds = array<i64: 8, 4>}, {pipeline_mode = #tpu.pipeline_mode<synchronous>, transform_indices = @transform_3, window_bounds = array<i64: 2, 1>}, {pipeline_mode = #tpu.pipeline_mode<synchronous>, transform_indices = @transform_4, window_bounds = array<i64: 2, 1>}, {pipeline_mode = #tpu.pipeline_mode<synchronous>, transform_indices = @transform_5, window_bounds = array<i64: 8, 1>}, {pipeline_mode = #tpu.pipeline_mode<synchronous>, transform_indices = @transform_6, window_bounds = array<i64: 8, 1>}]} {
    %c0_i32 = arith.constant 0 : i32
    %0 = arith.cmpi eq, %arg0, %c0_i32 : i32
    %c0_i32_0 = arith.constant 0 : i32
    %1 = arith.cmpi eq, %arg1, %c0_i32_0 : i32
    %2 = arith.andi %0, %1 : i1
    %3 = arith.extui %2 : i1 to i32
    %c0_i32_1 = arith.constant 0 : i32
    %4 = arith.cmpi ne, %3, %c0_i32_1 : i32
    scf.if %4 {
      %cst_29 = arith.constant 0.000000e+00 : f32
      %33 = vector.broadcast %cst_29 : f32 to vector<2x1xf32>
      %c0_30 = arith.constant 0 : index
      %c0_31 = arith.constant 0 : index
      %34 = vector.load %arg5[%c0_30, %c0_31] : memref<2x1xf32, #tpu.memory_space<vmem>>, vector<2x1xf32>
      tpu.vector_store %arg5[%c0_30, %c0_31], %33 {strides = array<i32>} : memref<2x1xf32, #tpu.memory_space<vmem>>, vector<2x1xf32>,
      %cst_32 = arith.constant 0.000000e+00 : f32
      %35 = vector.broadcast %cst_32 : f32 to vector<2x1xf32>
      %c0_33 = arith.constant 0 : index
      %c0_34 = arith.constant 0 : index
      %36 = vector.load %arg6[%c0_33, %c0_34] : memref<2x1xf32, #tpu.memory_space<vmem>>, vector<2x1xf32>
      tpu.vector_store %arg6[%c0_33, %c0_34], %35 {strides = array<i32>} : memref<2x1xf32, #tpu.memory_space<vmem>>, vector<2x1xf32>,
      %cst_35 = arith.constant 0.000000e+00 : f32
      %37 = vector.broadcast %cst_35 : f32 to vector<8x1xf32>
      %c0_36 = arith.constant 0 : index
      %c0_37 = arith.constant 0 : index
      %38 = vector.load %arg7[%c0_36, %c0_37] : memref<8x1xf32, #tpu.memory_space<vmem>>, vector<8x1xf32>
      tpu.vector_store %arg7[%c0_36, %c0_37], %37 {strides = array<i32>} : memref<8x1xf32, #tpu.memory_space<vmem>>, vector<8x1xf32>,
      %cst_38 = arith.constant 0.000000e+00 : f32
      %39 = vector.broadcast %cst_38 : f32 to vector<8x1xf32>
      %c0_39 = arith.constant 0 : index
      %c0_40 = arith.constant 0 : index
      %40 = vector.load %arg8[%c0_39, %c0_40] : memref<8x1xf32, #tpu.memory_space<vmem>>, vector<8x1xf32>
      tpu.vector_store %arg8[%c0_39, %c0_40], %39 {strides = array<i32>} : memref<8x1xf32, #tpu.memory_space<vmem>>, vector<8x1xf32>,
    } else {
    }
    %c0 = arith.constant 0 : index
    %c0_2 = arith.constant 0 : index
    %c0_3 = arith.constant 0 : index
    %5 = vector.load %arg2[%c0, %c0_2, %c0_3] : memref<1x4x256xf32, #tpu.memory_space<vmem>>, vector<1x4x256xf32>
    %6 = vector.shape_cast %5 : vector<1x4x256xf32> to vector<4x256xf32>
    %c0_4 = arith.constant 0 : index
    %c0_5 = arith.constant 0 : index
    %7 = vector.load %arg3[%c0_4, %c0_5] : memref<2x4xf32, #tpu.memory_space<vmem>>, vector<2x4xf32>
    %cst = arith.constant dense<0.000000e+00> : vector<2x256xf32>
    %8 = tpu.matmul %7, %6, %cst {dimension_numbers = #tpu.dot_dimension_numbers<[1], [0], [0], [1], [0, 0, 1, 1], [], []>} : vector<2x4xf32>, vector<4x256xf32>, vector<2x256xf32> -> vector<2x256xf32>
    %c0_6 = arith.constant 0 : index
    %c0_7 = arith.constant 0 : index
    %9 = vector.load %arg5[%c0_6, %c0_7] : memref<2x1xf32, #tpu.memory_space<vmem>>, vector<2x1xf32>
    %cst_8 = arith.constant dense<0.000000e+00> : vector<2xf32>
    %10 = vector.multi_reduction <add>, %8, %cst_8 [1] : vector<2x256xf32> to vector<2xf32>
    %11 = vector.shape_cast %10 : vector<2xf32> to vector<2x1xf32>
    %12 = arith.addf %9, %11 : vector<2x1xf32>
    %c0_9 = arith.constant 0 : index
    %c0_10 = arith.constant 0 : index
    %13 = vector.load %arg5[%c0_9, %c0_10] : memref<2x1xf32, #tpu.memory_space<vmem>>, vector<2x1xf32>
    tpu.vector_store %arg5[%c0_9, %c0_10], %12 {strides = array<i32>} : memref<2x1xf32, #tpu.memory_space<vmem>>, vector<2x1xf32>,
    %c0_11 = arith.constant 0 : index
    %c0_12 = arith.constant 0 : index
    %14 = vector.load %arg6[%c0_11, %c0_12] : memref<2x1xf32, #tpu.memory_space<vmem>>, vector<2x1xf32>
    %15 = arith.mulf %8, %8 : vector<2x256xf32>
    %cst_13 = arith.constant dense<0.000000e+00> : vector<2xf32>
    %16 = vector.multi_reduction <add>, %15, %cst_13 [1] : vector<2x256xf32> to vector<2xf32>
    %17 = vector.shape_cast %16 : vector<2xf32> to vector<2x1xf32>
    %18 = arith.addf %14, %17 : vector<2x1xf32>
    %c0_14 = arith.constant 0 : index
    %c0_15 = arith.constant 0 : index
    %19 = vector.load %arg6[%c0_14, %c0_15] : memref<2x1xf32, #tpu.memory_space<vmem>>, vector<2x1xf32>
    tpu.vector_store %arg6[%c0_14, %c0_15], %18 {strides = array<i32>} : memref<2x1xf32, #tpu.memory_space<vmem>>, vector<2x1xf32>,
    %c0_16 = arith.constant 0 : index
    %c0_17 = arith.constant 0 : index
    %20 = vector.load %arg4[%c0_16, %c0_17] : memref<8x4xf32, #tpu.memory_space<vmem>>, vector<8x4xf32>
    %cst_18 = arith.constant dense<0.000000e+00> : vector<8x256xf32>
    %21 = tpu.matmul %20, %6, %cst_18 {dimension_numbers = #tpu.dot_dimension_numbers<[1], [0], [0], [1], [0, 0, 1, 1], [], []>} : vector<8x4xf32>, vector<4x256xf32>, vector<8x256xf32> -> vector<8x256xf32>
    %c0_19 = arith.constant 0 : index
    %c0_20 = arith.constant 0 : index
    %22 = vector.load %arg7[%c0_19, %c0_20] : memref<8x1xf32, #tpu.memory_space<vmem>>, vector<8x1xf32>
    %cst_21 = arith.constant dense<0.000000e+00> : vector<8xf32>
    %23 = vector.multi_reduction <add>, %21, %cst_21 [1] : vector<8x256xf32> to vector<8xf32>
    %24 = vector.shape_cast %23 : vector<8xf32> to vector<8x1xf32>
    %25 = arith.addf %22, %24 : vector<8x1xf32>
    %c0_22 = arith.constant 0 : index
    %c0_23 = arith.constant 0 : index
    %26 = vector.load %arg7[%c0_22, %c0_23] : memref<8x1xf32, #tpu.memory_space<vmem>>, vector<8x1xf32>
    tpu.vector_store %arg7[%c0_22, %c0_23], %25 {strides = array<i32>} : memref<8x1xf32, #tpu.memory_space<vmem>>, vector<8x1xf32>,
    %c0_24 = arith.constant 0 : index
    %c0_25 = arith.constant 0 : index
    %27 = vector.load %arg8[%c0_24, %c0_25] : memref<8x1xf32, #tpu.memory_space<vmem>>, vector<8x1xf32>
    %28 = arith.mulf %21, %21 : vector<8x256xf32>
    %cst_26 = arith.constant dense<0.000000e+00> : vector<8xf32>
    %29 = vector.multi_reduction <add>, %28, %cst_26 [1] : vector<8x256xf32> to vector<8xf32>
    %30 = vector.shape_cast %29 : vector<8xf32> to vector<8x1xf32>
    %31 = arith.addf %27, %30 : vector<8x1xf32>
    %c0_27 = arith.constant 0 : index
    %c0_28 = arith.constant 0 : index
    %32 = vector.load %arg8[%c0_27, %c0_28] : memref<8x1xf32, #tpu.memory_space<vmem>>, vector<8x1xf32>
    tpu.vector_store %arg8[%c0_27, %c0_28], %31 {strides = array<i32>} : memref<8x1xf32, #tpu.memory_space<vmem>>, vector<8x1xf32>,
    return
  }
  func.func @transform_0(%arg0: i32, %arg1: i32) -> (i32, i32, i32) {
    %c0_i32 = arith.constant 0 : i32
    %c0_i32_0 = arith.constant 0 : i32
    return %arg0, %c0_i32, %arg1 : i32, i32, i32
  }
  func.func @transform_1(%arg0: i32, %arg1: i32) -> (i32, i32) {
    %c0_i32 = arith.constant 0 : i32
    %c0_i32_0 = arith.constant 0 : i32
    %c0_i32_1 = arith.constant 0 : i32
    return %c0_i32, %c0_i32_0 : i32, i32
  }
  func.func @transform_2(%arg0: i32, %arg1: i32) -> (i32, i32) {
    %c0_i32 = arith.constant 0 : i32
    %c0_i32_0 = arith.constant 0 : i32
    %c0_i32_1 = arith.constant 0 : i32
    return %c0_i32, %c0_i32_0 : i32, i32
  }
  func.func @transform_3(%arg0: i32, %arg1: i32) -> (i32, i32) {
    %c0_i32 = arith.constant 0 : i32
    %c0_i32_0 = arith.constant 0 : i32
    %c0_i32_1 = arith.constant 0 : i32
    return %c0_i32, %c0_i32_0 : i32, i32
  }
  func.func @transform_4(%arg0: i32, %arg1: i32) -> (i32, i32) {
    %c0_i32 = arith.constant 0 : i32
    %c0_i32_0 = arith.constant 0 : i32
    %c0_i32_1 = arith.constant 0 : i32
    return %c0_i32, %c0_i32_0 : i32, i32
  }
  func.func @transform_5(%arg0: i32, %arg1: i32) -> (i32, i32) {
    %c0_i32 = arith.constant 0 : i32
    %c0_i32_0 = arith.constant 0 : i32
    %c0_i32_1 = arith.constant 0 : i32
    return %c0_i32, %c0_i32_0 : i32, i32
  }
  func.func @transform_6(%arg0: i32, %arg1: i32) -> (i32, i32) {
    %c0_i32 = arith.constant 0 : i32
    %c0_i32_0 = arith.constant 0 : i32
    %c0_i32_1 = arith.constant 0 : i32
    return %c0_i32, %c0_i32_0 : i32, i32
  }
}

module attributes {stable_mosaic.version = 11 : i64} {
  func.func @_main_kernel(%arg0: i32, %arg1: i32, %arg2: memref<1x4x256xf32, #tpu.memory_space<vmem>>, %arg3: memref<2x4xf32, #tpu.memory_space<vmem>>, %arg4: memref<2x1xf32, #tpu.memory_space<vmem>>, %arg5: memref<8x2xf32, #tpu.memory_space<vmem>>, %arg6: memref<8x1xf32, #tpu.memory_space<vmem>>, %arg7: memref<8x4xf32, #tpu.memory_space<vmem>>, %arg8: memref<8x1xf32, #tpu.memory_space<vmem>>, %arg9: memref<1x8x256xf32, #tpu.memory_space<vmem>>) attributes {dimension_semantics = [#tpu.dimension_semantics<parallel>, #tpu.dimension_semantics<parallel>], iteration_bounds = array<i64: 2, 1>, scalar_prefetch = 0 : i64, scratch_operands = 0 : i64, tpu.core_type = #tpu.core_type<tc>, window_params = [{transform_indices = @transform_0, window_bounds = array<i64: 1, 4, 256>}, {pipeline_mode = #tpu.pipeline_mode<synchronous>, transform_indices = @transform_1, window_bounds = array<i64: 2, 4>}, {pipeline_mode = #tpu.pipeline_mode<synchronous>, transform_indices = @transform_2, window_bounds = array<i64: 2, 1>}, {pipeline_mode = #tpu.pipeline_mode<synchronous>, transform_indices = @transform_3, window_bounds = array<i64: 8, 2>}, {pipeline_mode = #tpu.pipeline_mode<synchronous>, transform_indices = @transform_4, window_bounds = array<i64: 8, 1>}, {pipeline_mode = #tpu.pipeline_mode<synchronous>, transform_indices = @transform_5, window_bounds = array<i64: 8, 4>}, {pipeline_mode = #tpu.pipeline_mode<synchronous>, transform_indices = @transform_6, window_bounds = array<i64: 8, 1>}, {transform_indices = @transform_7, window_bounds = array<i64: 1, 8, 256>}]} {
    %c0 = arith.constant 0 : index
    %c0_0 = arith.constant 0 : index
    %c0_1 = arith.constant 0 : index
    %0 = vector.load %arg2[%c0, %c0_0, %c0_1] : memref<1x4x256xf32, #tpu.memory_space<vmem>>, vector<1x4x256xf32>
    %1 = vector.shape_cast %0 : vector<1x4x256xf32> to vector<4x256xf32>
    %c0_2 = arith.constant 0 : index
    %c0_3 = arith.constant 0 : index
    %2 = vector.load %arg3[%c0_2, %c0_3] : memref<2x4xf32, #tpu.memory_space<vmem>>, vector<2x4xf32>
    %cst = arith.constant dense<0.000000e+00> : vector<2x256xf32>
    %3 = tpu.matmul %2, %1, %cst {dimension_numbers = #tpu.dot_dimension_numbers<[1], [0], [0], [1], [0, 0, 1, 1], [], []>} : vector<2x4xf32>, vector<4x256xf32>, vector<2x256xf32> -> vector<2x256xf32>
    %c0_4 = arith.constant 0 : index
    %c0_5 = arith.constant 0 : index
    %4 = vector.load %arg4[%c0_4, %c0_5] : memref<2x1xf32, #tpu.memory_space<vmem>>, vector<2x1xf32>
    %5 = vector.broadcast %4 : vector<2x1xf32> to vector<2x256xf32>
    %6 = arith.addf %3, %5 : vector<2x256xf32>
    %cst_6 = arith.constant 0.000000e+00 : f32
    %7 = vector.broadcast %cst_6 : f32 to vector<2x256xf32>
    %8 = arith.maximumf %6, %7 : vector<2x256xf32>
    %c0_7 = arith.constant 0 : index
    %c0_8 = arith.constant 0 : index
    %9 = vector.load %arg5[%c0_7, %c0_8] : memref<8x2xf32, #tpu.memory_space<vmem>>, vector<8x2xf32>
    %cst_9 = arith.constant dense<0.000000e+00> : vector<8x256xf32>
    %10 = tpu.matmul %9, %8, %cst_9 {dimension_numbers = #tpu.dot_dimension_numbers<[1], [0], [0], [1], [0, 0, 1, 1], [], []>} : vector<8x2xf32>, vector<2x256xf32>, vector<8x256xf32> -> vector<8x256xf32>
    %c0_10 = arith.constant 0 : index
    %c0_11 = arith.constant 0 : index
    %11 = vector.load %arg6[%c0_10, %c0_11] : memref<8x1xf32, #tpu.memory_space<vmem>>, vector<8x1xf32>
    %12 = vector.broadcast %11 : vector<8x1xf32> to vector<8x256xf32>
    %13 = arith.addf %10, %12 : vector<8x256xf32>
    %c0_12 = arith.constant 0 : index
    %c0_13 = arith.constant 0 : index
    %14 = vector.load %arg7[%c0_12, %c0_13] : memref<8x4xf32, #tpu.memory_space<vmem>>, vector<8x4xf32>
    %cst_14 = arith.constant dense<0.000000e+00> : vector<8x256xf32>
    %15 = tpu.matmul %14, %1, %cst_14 {dimension_numbers = #tpu.dot_dimension_numbers<[1], [0], [0], [1], [0, 0, 1, 1], [], []>} : vector<8x4xf32>, vector<4x256xf32>, vector<8x256xf32> -> vector<8x256xf32>
    %16 = arith.addf %13, %15 : vector<8x256xf32>
    %c0_15 = arith.constant 0 : index
    %c0_16 = arith.constant 0 : index
    %17 = vector.load %arg8[%c0_15, %c0_16] : memref<8x1xf32, #tpu.memory_space<vmem>>, vector<8x1xf32>
    %18 = vector.broadcast %17 : vector<8x1xf32> to vector<8x256xf32>
    %19 = arith.addf %16, %18 : vector<8x256xf32>
    %cst_17 = arith.constant 0.000000e+00 : f32
    %20 = vector.broadcast %cst_17 : f32 to vector<8x256xf32>
    %21 = arith.maximumf %19, %20 : vector<8x256xf32>
    %c0_18 = arith.constant 0 : index
    %c0_19 = arith.constant 0 : index
    %c0_20 = arith.constant 0 : index
    %22 = vector.load %arg9[%c0_18, %c0_19, %c0_20] : memref<1x8x256xf32, #tpu.memory_space<vmem>>, vector<1x8x256xf32>
    %23 = vector.shape_cast %22 : vector<1x8x256xf32> to vector<8x256xf32>
    %24 = vector.shape_cast %21 : vector<8x256xf32> to vector<1x8x256xf32>
    tpu.vector_store %arg9[%c0_18, %c0_19, %c0_20], %24 {strides = array<i32>} : memref<1x8x256xf32, #tpu.memory_space<vmem>>, vector<1x8x256xf32>,
    return
  }
  func.func @transform_0(%arg0: i32, %arg1: i32) -> (i32, i32, i32) {
    %c0_i32 = arith.constant 0 : i32
    %c0_i32_0 = arith.constant 0 : i32
    return %arg0, %c0_i32, %arg1 : i32, i32, i32
  }
  func.func @transform_1(%arg0: i32, %arg1: i32) -> (i32, i32) {
    %c0_i32 = arith.constant 0 : i32
    %c0_i32_0 = arith.constant 0 : i32
    %c0_i32_1 = arith.constant 0 : i32
    return %c0_i32, %c0_i32_0 : i32, i32
  }
  func.func @transform_2(%arg0: i32, %arg1: i32) -> (i32, i32) {
    %c0_i32 = arith.constant 0 : i32
    %c0_i32_0 = arith.constant 0 : i32
    %c0_i32_1 = arith.constant 0 : i32
    return %c0_i32, %c0_i32_0 : i32, i32
  }
  func.func @transform_3(%arg0: i32, %arg1: i32) -> (i32, i32) {
    %c0_i32 = arith.constant 0 : i32
    %c0_i32_0 = arith.constant 0 : i32
    %c0_i32_1 = arith.constant 0 : i32
    return %c0_i32, %c0_i32_0 : i32, i32
  }
  func.func @transform_4(%arg0: i32, %arg1: i32) -> (i32, i32) {
    %c0_i32 = arith.constant 0 : i32
    %c0_i32_0 = arith.constant 0 : i32
    %c0_i32_1 = arith.constant 0 : i32
    return %c0_i32, %c0_i32_0 : i32, i32
  }
  func.func @transform_5(%arg0: i32, %arg1: i32) -> (i32, i32) {
    %c0_i32 = arith.constant 0 : i32
    %c0_i32_0 = arith.constant 0 : i32
    %c0_i32_1 = arith.constant 0 : i32
    return %c0_i32, %c0_i32_0 : i32, i32
  }
  func.func @transform_6(%arg0: i32, %arg1: i32) -> (i32, i32) {
    %c0_i32 = arith.constant 0 : i32
    %c0_i32_0 = arith.constant 0 : i32
    %c0_i32_1 = arith.constant 0 : i32
    return %c0_i32, %c0_i32_0 : i32, i32
  }
  func.func @transform_7(%arg0: i32, %arg1: i32) -> (i32, i32, i32) {
    %c0_i32 = arith.constant 0 : i32
    %c0_i32_0 = arith.constant 0 : i32
    return %arg0, %c0_i32, %arg1 : i32, i32, i32
  }
}

</mosaic_0001>

<bundles_post_ra>
// kernel: bottleneck1x1.4
= control target key start
LH: loop header
LB: loop body
LE: loop exit
PB: predicated region body
PF: predicated region fallthrough
CT: control target
= control target key end

     0   :  { %s525_s18 = smov 0   ;;  %s527_s19 = smov 0   ;;  %s582_s0 = inlined_call_operand.vmem [shape: f32[2,4,256], index: 0, kind: input, shape index: {}]   ;;  %s583_s1 = inlined_call_operand.vmem [shape: f32[2,4], index: 1, kind: input, shape index: {}]   ;;  %s584_s2 = inlined_call_operand.vmem [shape: f32[2,1], index: 2, kind: input, shape index: {}]   ;;  %s585_s3 = inlined_call_operand.vmem [shape: f32[8,2], index: 3, kind: input, shape index: {}]   ;;  %s586_s4 = inlined_call_operand.vmem [shape: f32[8,1], index: 4, kind: output, shape index: {0}]   ;;  %s587_s5 = inlined_call_operand.vmem [shape: f32[8,1], index: 5, kind: output, shape index: {1}]  }
   0x1   :  { %s529_s20 = smov 0  }
   0x2 LB: > { %s28_s21 = sadd.s32 1, %s487_s19  ;;  %p426_p0 = scmp.ge.s32.totalorder %s491_s20, 1  ;;  %s491_s20 = sphi %s529_s20, %s16_s20   ;;  %s487_s19 = sphi %s527_s19, %s589_s19   ;;  %s483_s18 = sphi %s525_s18, %s588_s18  }
   0x3   : > { %p30_p1 = scmp.ge.s32.totalorder %s28_s21, 2  ;;  %p199_p2 = scmp.lt.s32.totalorder %s491_s20, 3 }
   0x5   : > { %s591_s21 = smov (%p30_p1, %s28_s21), 0  ;;  %p200_p3 = pnand %p426_p0, %p199_p2 }
   0x6   : > { %p227_p4 = scmp.lt.s32.totalorder (!%p200_p3), %s483_s18, 1  ;;  %p236_p5 = scmp.eq.s32.totalorder (!%p200_p3), %s483_s18, 0 }
   0x7   : > { %203 = sbr.rel (%p200_p3) target bundleno = 413 (0x19d), region = 36 }
   0xc   : > { %s593_s18 = smov (!%p227_p4, %s483_s18), 1  ;;  %241 = sbr.rel (!%p236_p5) target bundleno = 17 (0x11), region = 40  ;;  %vm242_vm0 = vcmask (%p236_p5), 7168   ;;  %v493_v0 = vmov (%p236_p5), 0.0  }
   0xd   : > { %s440_s22 = sshll.u32 %s593_s18, 3  ;;  %243 = vst.msk [vmem:[%s586_s4] sm:$0xff] (%p236_p5), %vm242_vm0, %v493_v0 }
   0xe   : > { %s234_s25 = scalar_lea.vmem %s582_s0, %s440_s22  ;;  %244 = vst.msk [vmem:[%s587_s5] sm:$0xff] (%p236_p5), %vm242_vm0, %v493_v0 }
  0x11 PF: > { %v245_v1 = vld [vmem:[%s234_s25] sm:$0xff]  ;;  %v494_v2 = vmov 0   ;;  %vm261_vm1 = vcmask 1043456   ;;  %vm257_vm2 = vcmask 31744   ;;  %vm313_vm3 = vcmask 1041408  }
  0x12   : > { %254 = vst [vmem:[#allocation1] ss:$2 sm:$0xff] %v245_v1  ;;  %468 = vset.pattern.permute.xlu0 %v494_v2  ;;  %v247_v3 = vld [vmem:[%s584_s2] sm:$0x3]  ;;  %vm309_vm4 = vcmask 15360   ;;  %vm365_vm5 = vcmask 7168  }
  0x13   : > { %250 = vperm.xlu0 %468, %v247_v3   ;;  %v246_v4 = vld [vmem:[%s583_s1] sm:$0x3] }
  0x14   : > { %v308_v14 = vld [vmem:[%s585_s3] sm:$0xff] }
  0x15   : > { %v360_v21 = vld [vmem:[%s586_s4] sm:$0xff] }
  0x16   : > { %v367_v23 = vld [vmem:[%s587_s5] sm:$0xff] }
  0x19   : > { %v255_v5 = vld.sshfl [vmem:[#allocation1] sm:$0xff pattern:$0x75316420]  ;;  %v256_v6 = vld.sshfl [vmem:[#allocation1 + $0x8] sm:$0xff pattern:$0x75316420] }
  0x1a   : > { %430 = vmatpush.msk.msra.mxu0 %vm261_vm1, %v255_v5  ;;  %432 = vmatpush.msk.msra.mxu1 %vm261_vm1, %v256_v6 }
  0x1b   : > { %431 = vmatmul.msk.f32.vlgmr.msra.gmra.mxu0 %vm257_vm2, %v246_v4  ;;  %433 = vmatmul.msk.f32.vlgmr.msra.gmra.mxu1 %vm257_vm2, %v246_v4 }
  0x85   : > { %v251_v7 = vpop.permute.xlu0 %250 }
  0x98   : > { %v283_v8 = vpop.f32.mrf.mxu0  ;;  %v303_v9 = vpop.f32.mrf.mxu1 }
  0x99   : > { %v284_v10 = vadd.f32 %v283_v8, %v251_v7  ;;  %v304_v11 = vadd.f32 %v303_v9, %v251_v7 }
  0x9b   : > { %v306_v12 = vmax.f32 %v284_v10, 0.0  ;;  %v307_v13 = vmax.f32 %v304_v11, 0.0 }
  0x9d   : > { %434 = vmatpush.msk.msra.mxu2 %vm313_vm3, %v306_v12  ;;  %436 = vmatpush.msk.msra.mxu3 %vm313_vm3, %v307_v13 }
  0x9e   : > { %435 = vmatmul.msk.f32.vlgmr.msra.gmra.mxu2 %vm309_vm4, %v308_v14  ;;  %437 = vmatmul.msk.f32.vlgmr.msra.gmra.mxu3 %vm309_vm4, %v308_v14 }
 0x121   : > { %v337_v15 = vpop.f32.mrf.mxu2  ;;  %v357_v16 = vpop.f32.mrf.mxu3 }
 0x122   : > { %v368_v17 = vmul.f32 %v337_v15, %v337_v15  ;;  %v361_v18 = vadd.f32 %v357_v16, %v337_v15  ;;  %v369_v19 = vmul.f32 %v357_v16, %v357_v16 }
 0x124   : > { %362 = vadd.xlane.f32.xlu0 %v361_v18  ;;  %v370_v20 = vadd.f32 %v369_v19, %v368_v17 }
 0x126   : > { %371 = vadd.xlane.f32.xlu1 %v370_v20 }
 0x197   : > { %v363_v22 = vpop.xlane.xlu0 %362 }
 0x198   : > { %v364_v24 = vadd.f32 %v363_v22, %v360_v21 }
 0x199   : > { %v372_v25 = vpop.xlane.xlu1 %371 }
 0x19a   : > { %366 = vst.msk [vmem:[%s586_s4] sm:$0xff] %vm365_vm5, %v364_v24  ;;  %v373_v26 = vadd.f32 %v372_v25, %v367_v23 }
 0x19c   : > { %374 = vst.msk [vmem:[%s587_s5] sm:$0xff] %vm365_vm5, %v373_v26 }
 0x19d PF: > { %s16_s20 = sadd.s32 1, %s491_s20   ;;  %s588_s18 = smov %s487_s19 }
 0x19e   : > { %p13_p6 = scmp.ge.s32.totalorder %s16_s20, 4   ;;  %s589_s19 = smov %s591_s21 }
 0x1a0   :  { %15 = sbr.rel (!%p13_p6) target bundleno = 2 (0x2), region = 74 }

// kernel: bottleneck1x1.5
= control target key start
LH: loop header
LB: loop body
LE: loop exit
PB: predicated region body
PF: predicated region fallthrough
CT: control target
= control target key end

     0   :  { %s708_s24 = smov 0   ;;  %s710_s25 = smov 0   ;;  %s763_s0 = inlined_call_operand.vmem [shape: f32[2,4,256], index: 0, kind: input, shape index: {}]   ;;  %s764_s1 = inlined_call_operand.vmem [shape: f32[2,4], index: 1, kind: input, shape index: {}]   ;;  %s765_s2 = inlined_call_operand.vmem [shape: f32[2,1], index: 2, kind: input, shape index: {}]   ;;  %s766_s3 = inlined_call_operand.vmem [shape: f32[8,2], index: 3, kind: input, shape index: {}]   ;;  %s767_s4 = inlined_call_operand.vmem [shape: f32[8,1], index: 4, kind: input, shape index: {}]   ;;  %s768_s5 = inlined_call_operand.vmem [shape: f32[8,4], index: 5, kind: input, shape index: {}]   ;;  %s769_s6 = inlined_call_operand.vmem [shape: f32[8,1], index: 6, kind: input, shape index: {}]   ;;  %s770_s7 = inlined_call_operand.vmem [shape: f32[2,8,256], index: 7, kind: output, shape index: {}]  }
   0x1   :  { %s712_s26 = smov 0  }
   0x2 LB: > { %s29_s27 = sadd.s32 1, %s661_s25  ;;  %p595_p0 = scmp.ge.s32.totalorder %s665_s26, 1  ;;  %s665_s26 = sphi %s712_s26, %s17_s26   ;;  %s661_s25 = sphi %s710_s25, %s772_s25   ;;  %s657_s24 = sphi %s708_s24, %s771_s24  }
   0x3   : > { %p31_p1 = scmp.ge.s32.totalorder %s29_s27, 2  ;;  %p258_p2 = scmp.lt.s32.totalorder %s665_s26, 3 }
   0x5   : > { %s774_s27 = smov (%p31_p1, %s29_s27), 0  ;;  %p259_p3 = pnand %p595_p0, %p258_p2 }
   0x6   : > { %p299_p4 = scmp.lt.s32.totalorder (!%p259_p3), %s657_s24, 1 }
   0x7   : > { %262 = sbr.rel (%p259_p3) target bundleno = 298 (0x12a), region = 48 }
   0xc   : > { %v667_v0 = vmov 0   ;;  %v320_v1 = vld [vmem:[%s765_s2] sm:$0x3]  ;;  %s776_s24 = smov (!%p299_p4, %s657_s24), 1  ;;  %vm334_vm0 = vcmask 1043456   ;;  %vm330_vm1 = vcmask 31744  }
   0xd   : > { %641 = vset.pattern.permute.xlu0 %v667_v0  ;;  %642 = vset.pattern.permute.xlu1 %v667_v0  ;;  %s614_s30 = sshll.u32 %s776_s24, 3  ;;  %v382_v3 = vld [vmem:[%s767_s4] sm:$0xff]  ;;  %vm392_vm2 = vcmask 1041408   ;;  %vm388_vm3 = vcmask 15360   ;;  %s615_s21 = sshll.u32 %s776_s24, 4 }
   0xe   : > { %323 = vperm.xlu0 %641, %v320_v1   ;;  %s306_s10 = scalar_lea.vmem %s763_s0, %s614_s30  ;;  %v319_v4 = vld [vmem:[%s764_s1] sm:$0x3]  ;;  %s316_s28 = scalar_lea.vmem %s770_s7, %s615_s21 }
   0xf   : > { %v318_v2 = vld [vmem:[%s306_s10] sm:$0xff] }
  0x10   : > { %327 = vst [vmem:[#allocation1] ss:$2 sm:$0xff] %v318_v2  ;;  %v439_v9 = vld [vmem:[%s768_s5] sm:$0xff] }
  0x11   : > { %v492_v10 = vld [vmem:[%s769_s6] sm:$0xff] }
  0x12   : > { %495 = vperm.xlu1 %642, %v492_v10   ;;  %v381_v18 = vld [vmem:[%s766_s3] sm:$0xff] }
  0x16   : > { %385 = vperm.xlu0 %641, %v382_v3  }
  0x17   : > { %v328_v5 = vld.sshfl [vmem:[#allocation1] sm:$0xff pattern:$0x75316420]  ;;  %v329_v6 = vld.sshfl [vmem:[#allocation1 + $0x8] sm:$0xff pattern:$0x75316420] }
  0x18   : > { %600 = vmatpush.msk.msra.mxu0 %vm334_vm0, %v328_v5  ;;  %602 = vmatpush.msk.msra.mxu1 %vm334_vm0, %v329_v6  ;;  %440 = vst [vmem:[#allocation1] ss:$2 sm:$0xff] %v318_v2 }
  0x19   : > { %601 = vmatmul.msk.f32.vlgmr.msra.gmra.mxu0 %vm330_vm1, %v319_v4  ;;  %603 = vmatmul.msk.f32.vlgmr.msra.gmra.mxu1 %vm330_vm1, %v319_v4 }
  0x1f   : > { %v441_v7 = vld.sshfl [vmem:[#allocation1] sm:$0xff pattern:$0x75316420]  ;;  %v442_v8 = vld.sshfl [vmem:[#allocation1 + $0x8] sm:$0xff pattern:$0x75316420] }
  0x20   : > { %608 = vmatpush.msk.msrb.mxu0 %vm334_vm0, %v441_v7  ;;  %610 = vmatpush.msk.msrb.mxu1 %vm334_vm0, %v442_v8 }
  0x21   : > { %609 = vmatmul.msk.f32.vlgmr.msrb.gmra.mxu0 %vm330_vm1, %v439_v9  ;;  %611 = vmatmul.msk.f32.vlgmr.msrb.gmra.mxu1 %vm330_vm1, %v439_v9 }
  0x80   : > { %v324_v11 = vpop.permute.xlu0 %323 }
  0x84   : > { %v496_v26 = vpop.permute.xlu1 %495 }
  0x88   : > { %v386_v19 = vpop.permute.xlu0 %385 }
  0x96   : > { %v356_v12 = vpop.f32.mrf.mxu0  ;;  %v376_v13 = vpop.f32.mrf.mxu1 }
  0x97   : > { %v357_v14 = vadd.f32 %v356_v12, %v324_v11  ;;  %v377_v15 = vadd.f32 %v376_v13, %v324_v11 }
  0x99   : > { %v379_v16 = vmax.f32 %v357_v14, 0.0  ;;  %v380_v17 = vmax.f32 %v377_v15, 0.0 }
  0x9b   : > { %604 = vmatpush.msk.msra.mxu2 %vm392_vm2, %v379_v16  ;;  %606 = vmatpush.msk.msra.mxu3 %vm392_vm2, %v380_v17 }
  0x9c   : > { %605 = vmatmul.msk.f32.vlgmr.msra.gmra.mxu2 %vm388_vm3, %v381_v18  ;;  %607 = vmatmul.msk.f32.vlgmr.msra.gmra.mxu3 %vm388_vm3, %v381_v18 }
  0x9e   : > { %v467_v20 = vpop.f32.mrf.mxu0  ;;  %v487_v21 = vpop.f32.mrf.mxu1 }
 0x11f   : > { %v416_v22 = vpop.f32.mrf.mxu2  ;;  %v436_v23 = vpop.f32.mrf.mxu3 }
 0x120   : > { %v417_v24 = vadd.f32 %v416_v22, %v386_v19  ;;  %v437_v25 = vadd.f32 %v436_v23, %v386_v19 }
 0x122   : > { %v490_v27 = vadd.f32 %v467_v20, %v417_v24  ;;  %v491_v28 = vadd.f32 %v487_v21, %v437_v25 }
 0x124   : > { %v498_v29 = vadd.f32 %v496_v26, %v490_v27  ;;  %v499_v30 = vadd.f32 %v496_v26, %v491_v28 }
 0x126   : > { %v500_v31 = vmax.f32 %v498_v29, 0.0  ;;  %v501_v32 = vmax.f32 %v499_v30, 0.0 }
 0x128   : > { %502 = vst [vmem:[%s316_s28] sm:$0xff] %v500_v31 }
 0x129   : > { %503 = vst [vmem:[%s316_s28 + $0x8] sm:$0xff] %v501_v32 }
 0x12a PF: > { %s17_s26 = sadd.s32 1, %s665_s26   ;;  %s771_s24 = smov %s661_s25 }
 0x12b   : > { %p14_p5 = scmp.ge.s32.totalorder %s17_s26, 4   ;;  %s772_s25 = smov %s774_s27 }
 0x12d   :  { %16 = sbr.rel (!%p14_p5) target bundleno = 2 (0x2), region = 78 }

// kernel: bottleneck1x1.3
= control target key start
LH: loop header
LB: loop body
LE: loop exit
PB: predicated region body
PF: predicated region fallthrough
CT: control target
= control target key end

     0   :  { %s574_s21 = smov 0   ;;  %s576_s22 = smov 0   ;;  %s646_s0 = inlined_call_operand.vmem [shape: f32[2,4,256], index: 0, kind: input, shape index: {}]   ;;  %s647_s1 = inlined_call_operand.vmem [shape: f32[2,4], index: 1, kind: input, shape index: {}]   ;;  %s648_s2 = inlined_call_operand.vmem [shape: f32[8,4], index: 2, kind: input, shape index: {}]   ;;  %s649_s3 = inlined_call_operand.vmem [shape: f32[2,1], index: 3, kind: output, shape index: {0}]   ;;  %s650_s4 = inlined_call_operand.vmem [shape: f32[2,1], index: 4, kind: output, shape index: {1}]   ;;  %s651_s5 = inlined_call_operand.vmem [shape: f32[8,1], index: 5, kind: output, shape index: {2}]   ;;  %s652_s6 = inlined_call_operand.vmem [shape: f32[8,1], index: 6, kind: output, shape index: {3}]  }
   0x1   :  { %s578_s23 = smov 0  }
   0x2 LB: > { %s29_s24 = sadd.s32 1, %s532_s22  ;;  %p473_p0 = scmp.ge.s32.totalorder %s536_s23, 1  ;;  %s536_s23 = sphi %s578_s23, %s17_s23   ;;  %s532_s22 = sphi %s576_s22, %s654_s22   ;;  %s528_s21 = sphi %s574_s21, %s653_s21  }
   0x3   : > { %p31_p1 = scmp.ge.s32.totalorder %s29_s24, 2  ;;  %p218_p2 = scmp.lt.s32.totalorder %s536_s23, 3 }
   0x5   : > { %s656_s24 = smov (%p31_p1, %s29_s24), 0  ;;  %p219_p3 = pnand %p473_p0, %p218_p2 }
   0x6   : > { %p248_p4 = scmp.lt.s32.totalorder (!%p219_p3), %s528_s21, 1  ;;  %p257_p5 = scmp.eq.s32.totalorder (!%p219_p3), %s528_s21, 0 }
   0x7   : > { %222 = sbr.rel (%p219_p3) target bundleno = 296 (0x128), region = 32 }
   0xc   : > { %s658_s21 = smov (!%p248_p4, %s528_s21), 1  ;;  %262 = sbr.rel (!%p257_p5) target bundleno = 17 (0x11), region = 36  ;;  %vm263_vm0 = vcmask (%p257_p5), 1024   ;;  %vm266_vm1 = vcmask (%p257_p5), 7168   ;;  %v538_v0 = vmov (%p257_p5), 0.0  }
   0xd   : > { %s487_s25 = sshll.u32 %s658_s21, 3  ;;  %264 = vst.msk [vmem:[%s649_s3] sm:$0x3] (%p257_p5), %vm263_vm0, %v538_v0 }
   0xe   : > { %s255_s28 = scalar_lea.vmem %s646_s0, %s487_s25  ;;  %265 = vst.msk [vmem:[%s650_s4] sm:$0x3] (%p257_p5), %vm263_vm0, %v538_v0 }
   0xf   : > { %267 = vst.msk [vmem:[%s651_s5] sm:$0xff] (%p257_p5), %vm266_vm1, %v538_v0 }
  0x10   : > { %268 = vst.msk [vmem:[%s652_s6] sm:$0xff] (%p257_p5), %vm266_vm1, %v538_v0 }
  0x11 PF: > { %v269_v1 = vld [vmem:[%s255_s28] sm:$0xff]  ;;  %vm279_vm2 = vcmask 1043456   ;;  %vm275_vm3 = vcmask 31744   ;;  %vm325_vm4 = vcmask 1041408   ;;  %vm332_vm5 = vcmask 1024  }
  0x12   : > { %272 = vst [vmem:[#allocation1] ss:$2 sm:$0xff] %v269_v1  ;;  %v270_v2 = vld [vmem:[%s647_s1] sm:$0x3]  ;;  %vm400_vm6 = vcmask 7168  }
  0x13   : > { %v344_v5 = vld [vmem:[%s648_s2] sm:$0xff] }
  0x14   : > { %v324_v24 = vld [vmem:[%s649_s3] sm:$0x3] }
  0x15   : > { %v334_v27 = vld [vmem:[%s650_s4] sm:$0x3] }
  0x16   : > { %v395_v30 = vld [vmem:[%s651_s5] sm:$0xff] }
  0x17   : > { %v402_v33 = vld [vmem:[%s652_s6] sm:$0xff] }
  0x19   : > { %v273_v3 = vld.sshfl [vmem:[#allocation1] sm:$0xff pattern:$0x75316420]  ;;  %v274_v4 = vld.sshfl [vmem:[#allocation1 + $0x8] sm:$0xff pattern:$0x75316420] }
  0x1a   : > { %477 = vmatpush.msk.msra.mxu0 %vm279_vm2, %v273_v3  ;;  %479 = vmatpush.msk.msra.mxu1 %vm279_vm2, %v274_v4  ;;  %345 = vst [vmem:[#allocation1] ss:$2 sm:$0xff] %v269_v1 }
  0x1b   : > { %478 = vmatmul.msk.f32.vlgmr.msra.gmra.mxu0 %vm275_vm3, %v270_v2  ;;  %480 = vmatmul.msk.f32.vlgmr.msra.gmra.mxu1 %vm275_vm3, %v270_v2 }
  0x21   : > { %v346_v6 = vld.sshfl [vmem:[#allocation1] sm:$0xff pattern:$0x75316420]  ;;  %v347_v7 = vld.sshfl [vmem:[#allocation1 + $0x8] sm:$0xff pattern:$0x75316420] }
  0x22   : > { %481 = vmatpush.msk.msra.mxu2 %vm279_vm2, %v346_v6  ;;  %483 = vmatpush.msk.msra.mxu3 %vm279_vm2, %v347_v7 }
  0x23   : > { %482 = vmatmul.msk.f32.vlgmr.msra.gmra.mxu2 %vm275_vm3, %v344_v5  ;;  %484 = vmatmul.msk.f32.vlgmr.msra.gmra.mxu3 %vm275_vm3, %v344_v5 }
  0x98   : > { %v301_v8 = vpop.f32.mrf.mxu0  ;;  %v321_v9 = vpop.f32.mrf.mxu1 }
  0x99   : > { %v326_v10 = vsel %vm325_vm4, %v301_v8, 0.0  ;;  %v335_v11 = vmul.f32 %v301_v8, %v301_v8  ;;  %v327_v12 = vsel %vm325_vm4, %v321_v9, 0.0  ;;  %v336_v13 = vmul.f32 %v321_v9, %v321_v9 }
  0x9a   : > { %v328_v14 = vadd.f32 %v327_v12, %v326_v10 }
  0x9b   : > { %v337_v15 = vsel %vm325_vm4, %v335_v11, 0.0  ;;  %v338_v16 = vsel %vm325_vm4, %v336_v13, 0.0 }
  0x9c   : > { %329 = vadd.xlane.f32.xlu0 %v328_v14  ;;  %v339_v17 = vadd.f32 %v338_v16, %v337_v15 }
  0xa4   : > { %340 = vadd.xlane.f32.xlu0 %v339_v17 }
  0xa6   : > { %v372_v18 = vpop.f32.mrf.mxu2  ;;  %v392_v19 = vpop.f32.mrf.mxu3 }
  0xa7   : > { %v396_v20 = vadd.f32 %v392_v19, %v372_v18  ;;  %v403_v21 = vmul.f32 %v372_v18, %v372_v18  ;;  %v404_v22 = vmul.f32 %v392_v19, %v392_v19 }
  0xa9   : > { %397 = vadd.xlane.f32.xlu1 %v396_v20  ;;  %v405_v23 = vadd.f32 %v404_v22, %v403_v21 }
  0xb1   : > { %406 = vadd.xlane.f32.xlu1 %v405_v23 }
 0x10f   : > { %v330_v25 = vpop.xlane.xlu0 %329 }
 0x110   : > { %v331_v26 = vadd.f32 %v330_v25, %v324_v24 }
 0x112   : > { %333 = vst.msk [vmem:[%s649_s3] sm:$0x3] %vm332_vm5, %v331_v26 }
 0x117   : > { %v341_v28 = vpop.xlane.xlu0 %340 }
 0x118   : > { %v342_v29 = vadd.f32 %v341_v28, %v334_v27 }
 0x11a   : > { %343 = vst.msk [vmem:[%s650_s4] sm:$0x3] %vm332_vm5, %v342_v29 }
 0x11c   : > { %v398_v31 = vpop.xlane.xlu1 %397 }
 0x11d   : > { %v399_v32 = vadd.f32 %v398_v31, %v395_v30 }
 0x11f   : > { %401 = vst.msk [vmem:[%s651_s5] sm:$0xff] %vm400_vm6, %v399_v32 }
 0x124   : > { %v407_v34 = vpop.xlane.xlu1 %406 }
 0x125   : > { %v408_v35 = vadd.f32 %v407_v34, %v402_v33 }
 0x127   : > { %409 = vst.msk [vmem:[%s652_s6] sm:$0xff] %vm400_vm6, %v408_v35 }
 0x128 PF: > { %s17_s23 = sadd.s32 1, %s536_s23   ;;  %s653_s21 = smov %s532_s22 }
 0x129   : > { %p14_p6 = scmp.ge.s32.totalorder %s17_s23, 4   ;;  %s654_s22 = smov %s656_s24 }
 0x12b   :  { %16 = sbr.rel (!%p14_p6) target bundleno = 2 (0x2), region = 86 }

</bundles_post_ra>
